<compile_context>
chip_gen: v7x
topology: tpu7x:2x2x1
jax: 0.10.0
libtpu: 0.0.40
codegen_flags: <defaults>
</compile_context>

<pallas_src>
import functools

import jax
import jax.numpy as jnp
from jax.experimental import pallas as pl
from jax.experimental.pallas import tpu as pltpu


def _autoencoder_kernel(x_ref,
                        w1_ref, b1_ref,
                        w2_ref, b2_ref,
                        w3_ref, b3_ref,
                        w4_ref, b4_ref,
                        out_ref):
    """Whole forward pass (4 matmuls + biases + ReLU) on one batch tile."""
    x = x_ref[...]

    def dense(a, w_ref, b_ref):
        w = w_ref[...]
        # Feed the MXU in the weights' dtype (f32 or bf16); accumulate in f32.
        # Bias add stays in f32 (biases are stored f32).
        return jnp.dot(a.astype(w.dtype), w,
                       preferred_element_type=jnp.float32) + b_ref[...]

    h = dense(x, w1_ref, b1_ref)      # encoder: Linear(input_dim -> encoding_dim)
    h = dense(h, w2_ref, b2_ref)      # encoder: Linear(encoding_dim -> encoding_dim//2)
    h = jnp.maximum(h, 0.0)           # ReLU (f32 epilogue)
    h = dense(h, w3_ref, b3_ref)      # decoder: Linear(encoding_dim//2 -> encoding_dim)
    y = dense(h, w4_ref, b4_ref)      # decoder: Linear(encoding_dim -> input_dim)

    out_ref[...] = y.astype(out_ref.dtype)


def _pick_batch_tile(batch):
    """MXU-friendly batch tile that leaves >= 2 grid steps when possible."""
    for t in (512, 256, 128):
        if batch % t == 0 and batch // t >= 2:
            return t
    for t in (512, 256, 128, 64, 32, 16, 8):
        if batch % t == 0:
            return t
    return batch  # tiny/odd batch: one full-size block (== full array dim)


def _const_block_spec(shape):
    """BlockSpec for a grid-invariant (weight/bias) input.

    The index_map is constant, so request single buffering: double-buffering
    these blocks is pure VMEM waste (important on v7x's 64 MiB VMEM).
    """
    index_map = lambda i: (0, 0)
    try:
        return pl.BlockSpec(shape, index_map, pipeline_mode=pl.Buffered(1))
    except TypeError:
        # Older BlockSpec signature without pipeline_mode: default buffering.
        return pl.BlockSpec(shape, index_map)


@functools.partial(jax.jit, static_argnames=("batch_tile", "weights_dtype"))
def autoencoder_forward(x, params, *, batch_tile=None, weights_dtype=jnp.float32):
    """x: (B, input_dim) float32.  params: dict of PyTorch-convention weights.

    Weights in `params` follow nn.Linear convention: W has shape (out, in),
    b has shape (out,).  Transposition / dtype casts are plain-JAX glue; the
    hot path (matmuls, bias adds, ReLU) runs in Pallas.
    """
    B, input_dim = x.shape
    if batch_tile is None:
        batch_tile = _pick_batch_tile(B)
    assert B % batch_tile == 0

    wdt = jnp.dtype(weights_dtype)

    # Glue: transpose to (in, out) and cast weights; biases stay f32 rows.
    w1 = params["w1"].T.astype(wdt)
    w2 = params["w2"].T.astype(wdt)
    w3 = params["w3"].T.astype(wdt)
    w4 = params["w4"].T.astype(wdt)
    b1 = params["b1"][None, :].astype(jnp.float32)
    b2 = params["b2"][None, :].astype(jnp.float32)
    b3 = params["b3"][None, :].astype(jnp.float32)
    b4 = params["b4"][None, :].astype(jnp.float32)

    enc_dim = w1.shape[1]
    mid_dim = w2.shape[1]

    # Cost estimate so XLA schedules surrounding ops sensibly.
    flops = 2 * B * (input_dim * enc_dim + enc_dim * mid_dim
                     + mid_dim * enc_dim + enc_dim * input_dim)
    w_bytes = (w1.size + w2.size + w3.size + w4.size) * wdt.itemsize
    b_bytes = (b1.size + b2.size + b3.size + b4.size) * 4
    io_bytes = 2 * B * input_dim * x.dtype.itemsize
    cost = pl.CostEstimate(flops=flops, transcendentals=0,
                           bytes_accessed=w_bytes + b_bytes + io_bytes)

    # VMEM budget: x/out tiles double-buffered, weights/biases single-buffered,
    # plus the in-flight intermediates; 2x headroom, clamped to sane bounds.
    tile_bytes = batch_tile * input_dim * x.dtype.itemsize
    inter_bytes = batch_tile * (2 * enc_dim + mid_dim + input_dim) * 4
    vmem_needed = 2 * 2 * tile_bytes + w_bytes + b_bytes + inter_bytes
    vmem_limit = int(min(max(2 * vmem_needed, 32 * 2**20), 96 * 2**20))

    # TODO(synk): if input_dim/encoding_dim grow until full-weight residency no
    # longer fits VMEM (esp. v7x), add a K/N reduction grid axis for W1/W4 with
    # an f32 accumulator and pl.when init/finalize ("arbitrary" axis).

    return pl.pallas_call(
        _autoencoder_kernel,
        out_shape=jax.ShapeDtypeStruct((B, input_dim), x.dtype),
        grid_spec=pltpu.PrefetchScalarGridSpec(
            num_scalar_prefetch=0,
            grid=(B // batch_tile,),
            in_specs=[
                pl.BlockSpec((batch_tile, input_dim), lambda i: (i, 0)),  # x
                _const_block_spec((input_dim, enc_dim)),                  # W1
                _const_block_spec((1, enc_dim)),                          # b1
                _const_block_spec((enc_dim, mid_dim)),                    # W2
                _const_block_spec((1, mid_dim)),                          # b2
                _const_block_spec((mid_dim, enc_dim)),                    # W3
                _const_block_spec((1, enc_dim)),                          # b3
                _const_block_spec((enc_dim, input_dim)),                  # W4
                _const_block_spec((1, input_dim)),                        # b4
            ],
            out_specs=pl.BlockSpec((batch_tile, input_dim), lambda i: (i, 0)),
        ),
        compiler_params=pltpu.CompilerParams(
            dimension_semantics=("parallel",),
            vmem_limit_bytes=vmem_limit),
        cost_estimate=cost,
    )(x, w1, b1, w2, b2, w3, b3, w4, b4)


def init_params(key, input_dim, encoding_dim):
    """Deterministic init mimicking nn.Linear default (uniform +/- 1/sqrt(fan_in))."""
    mid = encoding_dim // 2
    dims = [
        ("w1", (encoding_dim, input_dim)), ("b1", (encoding_dim,)),
        ("w2", (mid, encoding_dim)),       ("b2", (mid,)),
        ("w3", (encoding_dim, mid)),       ("b3", (encoding_dim,)),
        ("w4", (input_dim, encoding_dim)), ("b4", (input_dim,)),
    ]
    fan_in = {
        "w1": input_dim, "b1": input_dim,
        "w2": encoding_dim, "b2": encoding_dim,
        "w3": mid, "b3": mid,
        "w4": encoding_dim, "b4": encoding_dim,
    }
    params = {}
    keys = jax.random.split(key, len(dims))
    for (name, shape), k in zip(dims, keys):
        bound = 1.0 / (fan_in[name] ** 0.5)
        params[name] = jax.random.uniform(
            k, shape, dtype=jnp.float32, minval=-bound, maxval=bound)
    return params


def _reference_forward(x, params):
    """Pure-JAX reference mirroring the PyTorch forward (for validation)."""
    h = x @ params["w1"].T + params["b1"]
    h = h @ params["w2"].T + params["b2"]
    h = jnp.maximum(h, 0.0)
    h = h @ params["w3"].T + params["b3"]
    y = h @ params["w4"].T + params["b4"]
    return y


if __name__ == "__main__":
    key = jax.random.PRNGKey(0)
    # Small but non-degenerate shapes:
    #  - batch=256 with batch_tile=128 -> 2 grid steps (pipeline + megacore work)
    #  - input_dim=128 -> lane-dense output slab (no masked partial stores)
    batch = 256
    input_dim = 128
    encoding_dim = 64

    k_x, k_p = jax.random.split(key)
    x = jax.random.normal(k_x, (batch, input_dim), dtype=jnp.float32)
    params = init_params(k_p, input_dim, encoding_dim)

    ref = _reference_forward(x, params)

    # f32 weight path: tight tolerance against the reference.
    out = jax.block_until_ready(autoencoder_forward(x, params))
    assert out.shape == (batch, input_dim)
    assert jnp.allclose(out, ref, atol=1e-4, rtol=1e-4)

    # bf16 weight path (v6e/v7x fast path), f32 accumulation: looser tolerance.
    out_bf16 = jax.block_until_ready(
        autoencoder_forward(x, params, weights_dtype=jnp.bfloat16))
    assert out_bf16.shape == (batch, input_dim)
    assert jnp.allclose(out_bf16, ref, atol=1e-1, rtol=1e-1)

    print("KERNEL_OK")
</pallas_src>

<mosaic_0001>
module attributes {stable_mosaic.version = 11 : i64} {
  func.func @_autoencoder_kernel(%arg0: i32, %arg1: memref<128x128xf32, #tpu.memory_space<vmem>>, %arg2: memref<128x64xf32, #tpu.memory_space<vmem>>, %arg3: memref<1x64xf32, #tpu.memory_space<vmem>>, %arg4: memref<64x32xf32, #tpu.memory_space<vmem>>, %arg5: memref<1x32xf32, #tpu.memory_space<vmem>>, %arg6: memref<32x64xf32, #tpu.memory_space<vmem>>, %arg7: memref<1x64xf32, #tpu.memory_space<vmem>>, %arg8: memref<64x128xf32, #tpu.memory_space<vmem>>, %arg9: memref<1x128xf32, #tpu.memory_space<vmem>>, %arg10: memref<128x128xf32, #tpu.memory_space<vmem>>) attributes {dimension_semantics = [#tpu.dimension_semantics<parallel>], iteration_bounds = array<i64: 2>, scalar_prefetch = 0 : i64, scratch_operands = 0 : i64, tpu.core_type = #tpu.core_type<tc>, window_params = [{transform_indices = @transform_0, window_bounds = array<i64: 128, 128>}, {pipeline_mode = #tpu.pipeline_mode<synchronous>, transform_indices = @transform_1, window_bounds = array<i64: 128, 64>}, {pipeline_mode = #tpu.pipeline_mode<synchronous>, transform_indices = @transform_2, window_bounds = array<i64: 1, 64>}, {pipeline_mode = #tpu.pipeline_mode<synchronous>, transform_indices = @transform_3, window_bounds = array<i64: 64, 32>}, {pipeline_mode = #tpu.pipeline_mode<synchronous>, transform_indices = @transform_4, window_bounds = array<i64: 1, 32>}, {pipeline_mode = #tpu.pipeline_mode<synchronous>, transform_indices = @transform_5, window_bounds = array<i64: 32, 64>}, {pipeline_mode = #tpu.pipeline_mode<synchronous>, transform_indices = @transform_6, window_bounds = array<i64: 1, 64>}, {pipeline_mode = #tpu.pipeline_mode<synchronous>, transform_indices = @transform_7, window_bounds = array<i64: 64, 128>}, {pipeline_mode = #tpu.pipeline_mode<synchronous>, transform_indices = @transform_8, window_bounds = array<i64: 1, 128>}, {transform_indices = @transform_9, window_bounds = array<i64: 128, 128>}]} {
    %c0 = arith.constant 0 : index
    %c0_0 = arith.constant 0 : index
    %0 = vector.load %arg1[%c0, %c0_0] : memref<128x128xf32, #tpu.memory_space<vmem>>, vector<128x128xf32>
    %c0_1 = arith.constant 0 : index
    %c0_2 = arith.constant 0 : index
    %1 = vector.load %arg2[%c0_1, %c0_2] : memref<128x64xf32, #tpu.memory_space<vmem>>, vector<128x64xf32>
    %cst = arith.constant dense<0.000000e+00> : vector<128x64xf32>
    %2 = tpu.matmul %0, %1, %cst {dimension_numbers = #tpu.dot_dimension_numbers<[1], [0], [0], [1], [0, 0, 1, 1], [], []>} : vector<128x128xf32>, vector<128x64xf32>, vector<128x64xf32> -> vector<128x64xf32>
    %c0_3 = arith.constant 0 : index
    %c0_4 = arith.constant 0 : index
    %3 = vector.load %arg3[%c0_3, %c0_4] : memref<1x64xf32, #tpu.memory_space<vmem>>, vector<1x64xf32>
    %4 = vector.broadcast %3 : vector<1x64xf32> to vector<128x64xf32>
    %5 = arith.addf %2, %4 : vector<128x64xf32>
    %c0_5 = arith.constant 0 : index
    %c0_6 = arith.constant 0 : index
    %6 = vector.load %arg4[%c0_5, %c0_6] : memref<64x32xf32, #tpu.memory_space<vmem>>, vector<64x32xf32>
    %cst_7 = arith.constant dense<0.000000e+00> : vector<128x32xf32>
    %7 = tpu.matmul %5, %6, %cst_7 {dimension_numbers = #tpu.dot_dimension_numbers<[1], [0], [0], [1], [0, 0, 1, 1], [], []>} : vector<128x64xf32>, vector<64x32xf32>, vector<128x32xf32> -> vector<128x32xf32>
    %c0_8 = arith.constant 0 : index
    %c0_9 = arith.constant 0 : index
    %8 = vector.load %arg5[%c0_8, %c0_9] : memref<1x32xf32, #tpu.memory_space<vmem>>, vector<1x32xf32>
    %9 = vector.broadcast %8 : vector<1x32xf32> to vector<128x32xf32>
    %10 = arith.addf %7, %9 : vector<128x32xf32>
    %cst_10 = arith.constant 0.000000e+00 : f32
    %11 = vector.broadcast %cst_10 : f32 to vector<128x32xf32>
    %12 = arith.maximumf %10, %11 : vector<128x32xf32>
    %c0_11 = arith.constant 0 : index
    %c0_12 = arith.constant 0 : index
    %13 = vector.load %arg6[%c0_11, %c0_12] : memref<32x64xf32, #tpu.memory_space<vmem>>, vector<32x64xf32>
    %cst_13 = arith.constant dense<0.000000e+00> : vector<128x64xf32>
    %14 = tpu.matmul %12, %13, %cst_13 {dimension_numbers = #tpu.dot_dimension_numbers<[1], [0], [0], [1], [0, 0, 1, 1], [], []>} : vector<128x32xf32>, vector<32x64xf32>, vector<128x64xf32> -> vector<128x64xf32>
    %c0_14 = arith.constant 0 : index
    %c0_15 = arith.constant 0 : index
    %15 = vector.load %arg7[%c0_14, %c0_15] : memref<1x64xf32, #tpu.memory_space<vmem>>, vector<1x64xf32>
    %16 = vector.broadcast %15 : vector<1x64xf32> to vector<128x64xf32>
    %17 = arith.addf %14, %16 : vector<128x64xf32>
    %c0_16 = arith.constant 0 : index
    %c0_17 = arith.constant 0 : index
    %18 = vector.load %arg8[%c0_16, %c0_17] : memref<64x128xf32, #tpu.memory_space<vmem>>, vector<64x128xf32>
    %cst_18 = arith.constant dense<0.000000e+00> : vector<128x128xf32>
    %19 = tpu.matmul %17, %18, %cst_18 {dimension_numbers = #tpu.dot_dimension_numbers<[1], [0], [0], [1], [0, 0, 1, 1], [], []>} : vector<128x64xf32>, vector<64x128xf32>, vector<128x128xf32> -> vector<128x128xf32>
    %c0_19 = arith.constant 0 : index
    %c0_20 = arith.constant 0 : index
    %20 = vector.load %arg9[%c0_19, %c0_20] : memref<1x128xf32, #tpu.memory_space<vmem>>, vector<1x128xf32>
    %21 = vector.broadcast %20 : vector<1x128xf32> to vector<128x128xf32>
    %22 = arith.addf %19, %21 : vector<128x128xf32>
    %c0_21 = arith.constant 0 : index
    %c0_22 = arith.constant 0 : index
    %23 = vector.load %arg10[%c0_21, %c0_22] : memref<128x128xf32, #tpu.memory_space<vmem>>, vector<128x128xf32>
    tpu.vector_store %arg10[%c0_21, %c0_22], %22 {strides = array<i32>} : memref<128x128xf32, #tpu.memory_space<vmem>>, vector<128x128xf32>,
    return
  }
  func.func @transform_0(%arg0: i32) -> (i32, i32) {
    %c0_i32 = arith.constant 0 : i32
    %c0_i32_0 = arith.constant 0 : i32
    return %arg0, %c0_i32 : i32, i32
  }
  func.func @transform_1(%arg0: i32) -> (i32, i32) {
    %c0_i32 = arith.constant 0 : i32
    %c0_i32_0 = arith.constant 0 : i32
    %c0_i32_1 = arith.constant 0 : i32
    return %c0_i32, %c0_i32_0 : i32, i32
  }
  func.func @transform_2(%arg0: i32) -> (i32, i32) {
    %c0_i32 = arith.constant 0 : i32
    %c0_i32_0 = arith.constant 0 : i32
    %c0_i32_1 = arith.constant 0 : i32
    return %c0_i32, %c0_i32_0 : i32, i32
  }
  func.func @transform_3(%arg0: i32) -> (i32, i32) {
    %c0_i32 = arith.constant 0 : i32
    %c0_i32_0 = arith.constant 0 : i32
    %c0_i32_1 = arith.constant 0 : i32
    return %c0_i32, %c0_i32_0 : i32, i32
  }
  func.func @transform_4(%arg0: i32) -> (i32, i32) {
    %c0_i32 = arith.constant 0 : i32
    %c0_i32_0 = arith.constant 0 : i32
    %c0_i32_1 = arith.constant 0 : i32
    return %c0_i32, %c0_i32_0 : i32, i32
  }
  func.func @transform_5(%arg0: i32) -> (i32, i32) {
    %c0_i32 = arith.constant 0 : i32
    %c0_i32_0 = arith.constant 0 : i32
    %c0_i32_1 = arith.constant 0 : i32
    return %c0_i32, %c0_i32_0 : i32, i32
  }
  func.func @transform_6(%arg0: i32) -> (i32, i32) {
    %c0_i32 = arith.constant 0 : i32
    %c0_i32_0 = arith.constant 0 : i32
    %c0_i32_1 = arith.constant 0 : i32
    return %c0_i32, %c0_i32_0 : i32, i32
  }
  func.func @transform_7(%arg0: i32) -> (i32, i32) {
    %c0_i32 = arith.constant 0 : i32
    %c0_i32_0 = arith.constant 0 : i32
    %c0_i32_1 = arith.constant 0 : i32
    return %c0_i32, %c0_i32_0 : i32, i32
  }
  func.func @transform_8(%arg0: i32) -> (i32, i32) {
    %c0_i32 = arith.constant 0 : i32
    %c0_i32_0 = arith.constant 0 : i32
    %c0_i32_1 = arith.constant 0 : i32
    return %c0_i32, %c0_i32_0 : i32, i32
  }
  func.func @transform_9(%arg0: i32) -> (i32, i32) {
    %c0_i32 = arith.constant 0 : i32
    %c0_i32_0 = arith.constant 0 : i32
    return %arg0, %c0_i32 : i32, i32
  }
}

</mosaic_0001>

<bundles_post_ra>
// kernel: autoencoder_forward.1
= control target key start
LH: loop header
LB: loop body
LE: loop exit
PB: predicated region body
PF: predicated region fallthrough
CT: control target
= control target key end

     0   :  { %14 = vsyncpa [#allocation3], 0  ;;  %s2331_s0 = inlined_call_operand.vmem [shape: f32[256,128], index: 0, kind: input, shape index: {}]   ;;  %s2332_s1 = inlined_call_operand.vmem [shape: f32[128,64], index: 1, kind: input, shape index: {}]   ;;  %s2333_s2 = inlined_call_operand.vmem [shape: f32[1,64], index: 2, kind: input, shape index: {}]   ;;  %s2334_s3 = inlined_call_operand.vmem [shape: f32[64,32], index: 3, kind: input, shape index: {}]   ;;  %s2335_s4 = inlined_call_operand.vmem [shape: f32[1,32], index: 4, kind: input, shape index: {}]   ;;  %s2336_s5 = inlined_call_operand.hbm [shape: f32[32,64], index: 5, kind: input, shape index: {}]   ;;  %s2337_s6 = inlined_call_operand.vmem [shape: f32[1,64], index: 6, kind: input, shape index: {}]   ;;  %s2338_s7 = inlined_call_operand.hbm [shape: f32[64,128], index: 7, kind: input, shape index: {}]   ;;  %s2339_s8 = inlined_call_operand.vmem [shape: f32[1,128], index: 8, kind: input, shape index: {}]   ;;  %s2340_s9 = inlined_call_operand.hbm [shape: f32[256,128], index: 9, kind: output, shape index: {}]  }
   0x1   :  { %15 = vsyncpa [#allocation6], 0 }
   0x2   :  { %16 = vsyncpa [#allocation4], 0 }
   0x3   :  { %18 = vsyncpa [#allocation4 + $0x1], 0  ;;  %s1966_s30 = smov 0   ;;  %s1968_s10 = smov 0  }
   0x4   :  { %s1970_s11 = smov 0   ;;  %s1972_s12 = smov 0  }
   0x5 LB: > { %2347 = sst [smem:[#allocation11_spill]] %s1903_s11  ;;  %s1987_s13 = sadd.s32 4294967295, %s1907_s12   ;;  %s1907_s12 = sphi %s1972_s12, %s2361_s12   ;;  %s1903_s11 = sphi %s1970_s11, %s2363_s11   ;;  %s1899_s10 = sphi %s1968_s10, %s2365_s10   ;;  %s1895_s30 = sphi %s1966_s30, %s2364_s30  }
   0x6   : > { %s1300_s14 = sadd.s32 4294967294, %s1907_s12   ;;  %s1991_s15 = sadd.s32 1, %s1907_s12  }
   0x7   : > { %2348 = sst [smem:[#allocation12_spill]] %s1991_s15  ;;  %s225_s16 = sadd.s32 1, %s1903_s11 }
   0x8   : > { %s222_s17 = ssub.s32 %s1907_s12, %s1991_s15  ;;  %p235_p0 = scmp.ne.s32.totalorder %s1903_s11, %s1899_s10 }
   0x9   : > { %p223_p1 = scmp.eq.s32.totalorder %s222_s17, 0  ;;  %p236_p2 = scmp.eq.s32.totalorder %s1987_s13, 1 }
   0xa   : > { %p241_p3 = scmp.ne.s32.totalorder %s1899_s10, %s1895_s30  ;;  %p242_p4 = scmp.eq.s32.totalorder %s1300_s14, 1 }
   0xb   : > { %s2002_s18 = scalar_select %p223_p1, %s1903_s11, %s225_s16  }
   0xc   : > { %p2004_p5 = por %p236_p2, %p235_p0  ;;  %p2008_p6 = por %p242_p4, %p241_p3 }
   0xd   : > { %2349 = sst [smem:[#allocation13_spill]] %s2002_s18  ;;  %p1301_p7 = scmp.ge.s32.totalorder %s1907_s12, 1 }
   0xe   : > { %s2350_s19 = scalar_select %p2004_p5, 1, 0 }
   0xf   : > { %s2351_s20 = scalar_select %p2008_p6, 1, 0 }
  0x10   : > { %p249_p8 = scmp.lt.s32.totalorder %s1907_s12, 3  ;;  %p2341_p9 = scmp.eq.s32.totalorder %s1987_s13, 0 }
  0x11   : > { %s1909_s22 = smov [#allocation2]   ;;  %s1910_s25 = smov [#allocation5]  }
  0x12   : > { %p2015_p10 = pnand %p1301_p7, %p249_p8  ;;  %s273_s23 = sshll.u32 %s1909_s22, 4  ;;  %s274_s23 = int_to_ptr.vmem [resolvable:$true] %s273_s23 }
  0x13   : > { %s289_s26 = sshll.u32 %s1910_s25, 4  ;;  %s1781_s29 = scalar_lea.hbm %s2336_s5, 512  ;;  %s2027_s26 = int_to_ptr.vmem [resolvable:$true] %s289_s26 }
  0x14   : > { %s2352_s21 = scalar_select %p2015_p10, 1, 0 }
  0x15   : > { %p1727_p11 = pneg %p2015_p10  ;;  %p1782_p13 = scmp.ne.s32.totalorder %s2336_s5, %s1781_s29 }
  0x16   : > { %p1788_p3 = scmp.lt.u32.totalorder %s1781_s29, %s2336_s5 }
  0x17   : > { %p2023_p12 = pnand %p2341_p9, %p1727_p11 }
  0x19   : > { %p1783_p0 = pneg %p2023_p12 }
  0x1b   : > { %p1784_p1 = pnand %p1783_p0, %p1782_p13 }
  0x1d   : > { %p1785_p2 = pneg %p1784_p1 }
  0x1f   : > { %p1790_p4 = pnand %p1788_p3, %p1785_p2 }
  0x21   : > { %1793 = shalt.err (!%p1790_p4)
}
  0x22   : > { %s1794_s25 = scalar_lea.vmem %s274_s23, 512  ;;  %p1802_p9 = scmp.lt.s32.totalorder %s274_s23, %s274_s23 }
  0x23   : > { %p1795_p7 = scmp.ne.s32.totalorder %s274_s23, %s1794_s25  ;;  %p1803_p6 = scmp.lt.s32.totalorder %s1794_s25, %s1794_s25 }
  0x25   : > { %p1797_p8 = pnand %p1795_p7, %p1783_p0  ;;  %p1804_p5 = por %p1803_p6, %p1802_p9 }
  0x27   : > { %p1798_p11 = pneg %p1797_p8 }
  0x29   : > { %p1805_p10 = pnand %p1804_p5, %p1798_p11 }
  0x2b   : > { %1808 = shalt.err (!%p1805_p10)
}
  0x2c   : > { %s1911_s27 = smov 128   ;;  %s1912_s28 = smov 8  }
  0x2d   : > { %1730 = dma.hbm_to_vmem [thread:$0]  (!%p2023_p12), %s2336_s5, 512, %s274_s23, [#allocation3], %s1911_s27, %s1911_s27, %s1912_s28  }
  0x2e   : > { %s1809_s22 = scalar_lea.hbm %s2338_s7, 1024 }
  0x2f   : > { %p1810_p13 = scmp.ne.s32.totalorder %s2338_s7, %s1809_s22  ;;  %p1816_p9 = scmp.lt.u32.totalorder %s1809_s22, %s2338_s7 }
  0x31   : > { %p1812_p5 = pnand %p1810_p13, %p1783_p0 }
  0x33   : > { %p1813_p6 = pneg %p1812_p5 }
  0x35   : > { %p1818_p10 = pnand %p1816_p9, %p1813_p6 }
  0x37   : > { %1821 = shalt.err (!%p1818_p10)
}
  0x38   : > { %s1822_s23 = scalar_lea.vmem %s2027_s26, 1024  ;;  %p1830_p4 = scmp.lt.s32.totalorder %s2027_s26, %s2027_s26 }
  0x39   : > { %p1823_p1 = scmp.ne.s32.totalorder %s2027_s26, %s1822_s23  ;;  %p1831_p7 = scmp.lt.s32.totalorder %s1822_s23, %s1822_s23 }
  0x3b   : > { %p1825_p2 = pnand %p1823_p1, %p1783_p0  ;;  %p1832_p8 = por %p1831_p7, %p1830_p4 }
  0x3d   : > { %p1826_p3 = pneg %p1825_p2 }
  0x3f   : > { %p1833_p11 = pnand %p1832_p8, %p1826_p3 }
  0x41   : > { %1836 = shalt.err (!%p1833_p11)
}
  0x42   : > { %1733 = dma.hbm_to_vmem [thread:$0]  (!%p2023_p12), %s2338_s7, 1024, %s2027_s26, [#allocation6], %s1911_s27, %s1911_s27, %s1912_s28  }
  0x43   : > { %p2354_p13 = scmp.ne.s32.totalorder %s2352_s21, 0 }
  0x44   : > { %p2355_p5 = scmp.eq.s32.totalorder (!%p2354_p13), %s1987_s13, 0 }
  0x45   : > { %317 = sbr.rel (%p2354_p13) target bundleno = 1024 (0x400), region = 56 }
  0x4c   : > { %1882 = dma.done.wait (%p2355_p5), [#allocation3], 512   ;;  %p2356_p0 = pmov %p2355_p5 }
  0x4e   : > { %1884 = vsyncadd (%p2356_p0), [#allocation3], 4294966784  ;;  %p2357_p6 = pmov %p2356_p0 }
  0x4f   : > { %p2358_p9 = pmov %p2356_p0 }
  0x50   : > { %1886 = dma.done.wait (%p2357_p6), [#allocation6], 1024  }
  0x51   : > { %1888 = vsyncadd (%p2358_p9), [#allocation6], 4294966272  ;;  %s1309_s18 = sshll.u32 %s1987_s13, 4  ;;  %v380_v0 = vld [vmem:[%s2332_s1] sm:$0xff]  ;;  %v381_v1 = vld [vmem:[%s2332_s1 + $0x8] sm:$0xff]  ;;  %vm563_vm0 = vcmask 523264  }
  0x52   : > { %p358_p10 = scmp.lt.s32.totalorder %s1309_s18, 31  ;;  %v382_v2 = vld [vmem:[%s2332_s1 + $0x10] sm:$0xff]  ;;  %v1637_v3 = vpack.c.bf16 %v381_v1, %v380_v0  ;;  %v383_v4 = vld [vmem:[%s2332_s1 + $0x18] sm:$0xff]  ;;  %v384_v6 = vld [vmem:[%s2332_s1 + $0x20] sm:$0xff]  ;;  %vm784_vm1 = vcmask 261120   ;;  %p2359_p1 = scmp.ne.s32.totalorder %s2350_s19, 0 }
  0x53   : > { %v1641_v5 = vpack.c.bf16 %v383_v4, %v382_v2  ;;  %v385_v7 = vld [vmem:[%s2332_s1 + $0x28] sm:$0xff]  ;;  %v386_v10 = vld [vmem:[%s2332_s1 + $0x30] sm:$0xff]  ;;  %v387_v11 = vld [vmem:[%s2332_s1 + $0x38] sm:$0xff] }
  0x54   : > { %s2367_s18 = smov (!%p358_p10, %s1309_s18), 31  ;;  %1638 = vmatprep.subr.bf16.mxu0 %v1637_v3  ;;  %v1645_v8 = vpack.c.bf16 %v385_v7, %v384_v6  ;;  %v1649_v12 = vpack.c.bf16 %v387_v11, %v386_v10  ;;  %v388_v13 = vld [vmem:[%s2332_s1 + $0x40] sm:$0xff]  ;;  %v389_v14 = vld [vmem:[%s2332_s1 + $0x48] sm:$0xff]  ;;  %v550_v17 = vld [vmem:[%s2334_s3 + $0x10] sm:$0xff] }
  0x55   : > { %s1310_s24 = sshll.u32 %s2367_s18, 3  ;;  %1640 = vmatpush3.bf16.msra.mxu0 %v1637_v3  ;;  %v548_v15 = vld [vmem:[%s2334_s3] sm:$0xff]  ;;  %v549_v16 = vld [vmem:[%s2334_s3 + $0x8] sm:$0xff]  ;;  %v551_v18 = vld [vmem:[%s2334_s3 + $0x18] sm:$0xff]  ;;  %v1653_v21 = vpack.c.bf16 %v389_v14, %v388_v13  ;;  %s354_s18 = sand.u32 1, %s1899_s10  }
  0x56   : > { %s2108_s26 = scalar_lea.vmem %s2331_s0, %s1310_s24  ;;  %1642 = vmatprep.subr.bf16.mxu0 %v1641_v5  ;;  %v1669_v19 = vpack.c.bf16 %v549_v16, %v548_v15  ;;  %v1673_v20 = vpack.c.bf16 %v551_v18, %v550_v17  ;;  %v552_v22 = vld [vmem:[%s2334_s3 + $0x20] sm:$0xff]  ;;  %v553_v23 = vld [vmem:[%s2334_s3 + $0x28] sm:$0xff]  ;;  %v390_v24 = vld [vmem:[%s2332_s1 + $0x50] sm:$0xff]  ;;  %s1308_s21 = sshll.u32 %s354_s18, 7 }
  0x57   : > { %v364_v9 = vld [vmem:[%s2108_s26] sm:$0xff]  ;;  %v391_v25 = vld [vmem:[%s2332_s1 + $0x58] sm:$0xff]  ;;  %v1677_v26 = vpack.c.bf16 %v553_v23, %v552_v22  ;;  %v393_v29 = vld [vmem:[%s2332_s1 + $0x68] sm:$0xff]  ;;  %s2261_s29 = scalar_lea.vmem [#allocation7], %s1308_s21  ;;  %s1368_s24 = sshll.u32 %s1987_s13, 11 }
  0x58   : > { %1501 = vmatprep.mubr.f32.mxu0 %v364_v9  ;;  %1670 = vmatprep.subr.bf16.mxu1 %v1669_v19  ;;  %v1657_v27 = vpack.c.bf16 %v391_v25, %v390_v24  ;;  %v392_v28 = vld [vmem:[%s2332_s1 + $0x60] sm:$0xff]  ;;  %v394_v31 = vld [vmem:[%s2332_s1 + $0x70] sm:$0xff]  ;;  %v395_v32 = vld [vmem:[%s2332_s1 + $0x78] sm:$0xff]  ;;  %s1216_s14 = sshll.u32 %s2261_s29, 4  ;;  %s2282_s22 = scalar_lea.hbm %s2340_s9, %s1368_s24  ;;  %s2284_s14 = int_to_ptr.vmem [resolvable:$true] %s1216_s14 }
  0x59   : > { %1644 = vmatpush3.bf16.msra.mxu0 %v1641_v5  ;;  %1672 = vmatpush3.bf16.msra.mxu1 %v1669_v19  ;;  %v1661_v30 = vpack.c.bf16 %v393_v29, %v392_v28  ;;  %v1665_v33 = vpack.c.bf16 %v395_v32, %v394_v31  ;;  %v365_v34 = vld [vmem:[%s2108_s26 + $0x8] sm:$0xff]  ;;  %v366_v35 = vld [vmem:[%s2108_s26 + $0x10] sm:$0xff]  ;;  %v367_v36 = vld [vmem:[%s2108_s26 + $0x18] sm:$0xff]  ;;  %s2290_s13 = scalar_lea.sflag [#allocation4], %s354_s18  ;;  %s1837_s25 = scalar_lea.vmem %s2284_s14, 2048 }
  0x5a   : > { %1646 = vmatprep.subr.bf16.mxu0 %v1645_v8  ;;  %1674 = vmatprep.subr.bf16.mxu1 %v1673_v20  ;;  %v368_v37 = vld [vmem:[%s2108_s26 + $0x20] sm:$0xff]  ;;  %v369_v38 = vld [vmem:[%s2108_s26 + $0x28] sm:$0xff]  ;;  %v370_v39 = vld [vmem:[%s2108_s26 + $0x30] sm:$0xff]  ;;  %p1838_p12 = scmp.ne.s32.totalorder %s2284_s14, %s1837_s25 }
  0x5b   : > { %v371_v40 = vld [vmem:[%s2108_s26 + $0x38] sm:$0xff]  ;;  %v372_v41 = vld [vmem:[%s2108_s26 + $0x40] sm:$0xff]  ;;  %v373_v42 = vld [vmem:[%s2108_s26 + $0x48] sm:$0xff] }
  0x5c   : > { %v374_v43 = vld [vmem:[%s2108_s26 + $0x50] sm:$0xff]  ;;  %v375_v44 = vld [vmem:[%s2108_s26 + $0x58] sm:$0xff]  ;;  %v376_v45 = vld [vmem:[%s2108_s26 + $0x60] sm:$0xff]  ;;  %p1839_p2 = pnand %p1838_p12, %p2359_p1 }
  0x5d   : > { %1648 = vmatpush3.bf16.msra.mxu0 %v1645_v8  ;;  %1676 = vmatpush3.bf16.msra.mxu1 %v1673_v20  ;;  %v377_v46 = vld [vmem:[%s2108_s26 + $0x68] sm:$0xff]  ;;  %v378_v47 = vld [vmem:[%s2108_s26 + $0x70] sm:$0xff]  ;;  %v379_v48 = vld [vmem:[%s2108_s26 + $0x78] sm:$0xff]  ;;  %s1913_s26 = smov [#allocation7]  }
  0x5e   : > { %1650 = vmatprep.subr.bf16.mxu0 %v1649_v12  ;;  %1678 = vmatprep.subr.bf16.mxu1 %v1677_v26  ;;  %v554_v49 = vld [vmem:[%s2334_s3 + $0x30] sm:$0xff]  ;;  %v555_v50 = vld [vmem:[%s2334_s3 + $0x38] sm:$0xff]  ;;  %v773_v52 = vld [vmem:[#allocation2] sm:$0xff]  ;;  %p1840_p3 = pneg %p1839_p2  ;;  %s1841_s23 = sshll.u32 %s1913_s26, 4  ;;  %s1842_s23 = int_to_ptr.vmem [resolvable:$false] %s1841_s23 }
  0x5f   : > { %v1681_v51 = vpack.c.bf16 %v555_v50, %v554_v49  ;;  %v774_v53 = vld [vmem:[#allocation2 + $0x8] sm:$0xff]  ;;  %v1311_v55 = vld [vmem:[%s2333_s2] ss:$0 sm:$0xff]  ;;  %v775_v57 = vld [vmem:[#allocation2 + $0x10] sm:$0xff]  ;;  %s1843_s11 = scalar_lea.vmem %s1842_s23, 4096  ;;  %p1844_p4 = scmp.lt.s32.totalorder %s2284_s14, %s1842_s23 }
  0x60   : > { %v1685_v54 = vpack.c.bf16 %v774_v53, %v773_v52  ;;  %v776_v58 = vld [vmem:[#allocation2 + $0x18] sm:$0xff]  ;;  %v979_v28 = vld [vmem:[#allocation5 + $0x8] sm:$0xff]  ;;  %v980_v29 = vld [vmem:[#allocation5 + $0x10] sm:$0xff]  ;;  %p1845_p7 = scmp.lt.s32.totalorder %s1843_s11, %s1837_s25 }
  0x61   : > { %1652 = vmatpush3.bf16.msra.mxu0 %v1649_v12  ;;  %1680 = vmatpush3.bf16.msra.mxu1 %v1677_v26  ;;  %v1689_v62 = vpack.c.bf16 %v776_v58, %v775_v57  ;;  %v981_v31 = vld [vmem:[#allocation5 + $0x18] sm:$0xff] }
  0x62   : > { %1654 = vmatprep.subr.bf16.mxu0 %v1653_v21  ;;  %1682 = vmatprep.subr.bf16.mxu1 %v1681_v51  ;;  %v1697_v32 = vpack.c.bf16 %v981_v31, %v980_v29  ;;  %p1846_p8 = por %p1845_p7, %p1844_p4 }
  0x64   : > { %p1847_p11 = pnand %p1846_p8, %p1840_p3 }
  0x65   : > { %1656 = vmatpush3.bf16.msra.mxu0 %v1653_v21  ;;  %1684 = vmatpush3.bf16.msra.mxu1 %v1681_v51 }
  0x66   : > { %1658 = vmatprep.subr.bf16.mxu0 %v1657_v27  ;;  %1686 = vmatprep.subr.bf16.mxu1 %v1685_v54 }
  0x69   : > { %1660 = vmatpush3.bf16.msra.mxu0 %v1657_v27  ;;  %v978_v27 = vld [vmem:[#allocation5] sm:$0xff] }
  0x6a   : > { %1662 = vmatprep.subr.bf16.mxu0 %v1661_v30 }
  0x6d   : > { %1664 = vmatpush3.bf16.msra.mxu0 %v1661_v30  ;;  %v1693_v30 = vpack.c.bf16 %v979_v28, %v978_v27 }
  0x6e   : > { %1666 = vmatprep.subr.bf16.mxu0 %v1665_v33 }
  0x71   : > { %1668 = vmatpush3.bf16.msra.mxu0 %v1665_v33  ;;  %v982_v33 = vld [vmem:[#allocation5 + $0x20] sm:$0xff] }
  0x72   : > { %1694 = vmatprep.subr.bf16.mxu0 %v1693_v30 }
  0x74   : > { %1502 = vmatmul.mubr.f32.vlgmr.msra.gmra.mrb[0].mxu0 %v365_v34  ;;  %v983_v34 = vld [vmem:[#allocation5 + $0x28] sm:$0xff] }
  0x75   : > { %1504 = vmatprep.mubr.f32.mxu0 %v366_v35  ;;  %1696 = vmatpush3.bf16.msra.mxu0 %v1693_v30  ;;  %v1701_v35 = vpack.c.bf16 %v983_v34, %v982_v33 }
  0x76   : > { %1698 = vmatprep.subr.bf16.mxu0 %v1697_v32 }
  0x78   : > { %1505 = vmatmul.mubr.f32.gmra.mrb[2].mxu0 %v367_v36  ;;  %v2202_v36 = vld [vmem:[%s2335_s4] ss:$0 sm:$0xff] }
  0x79   : > { %1507 = vmatprep.mubr.f32.mxu0 %v368_v37  ;;  %1700 = vmatpush3.bf16.msra.mxu0 %v1697_v32 }
  0x7a   : > { %1702 = vmatprep.subr.bf16.mxu0 %v1701_v35 }
  0x7c   : > { %1508 = vmatmul.mubr.f32.gmra.mrb[4].mxu0 %v369_v38 }
  0x7d   : > { %1510 = vmatprep.mubr.f32.mxu0 %v370_v39  ;;  %1704 = vmatpush3.bf16.msra.mxu0 %v1701_v35 }
  0x80   : > { %1511 = vmatmul.mubr.f32.gmra.mrb[6].mxu0 %v371_v40 }
  0x81   : > { %1513 = vmatprep.mubr.f32.mxu0 %v372_v41 }
  0x84   : > { %1514 = vmatmul.mubr.f32.gmra.mrb[8].mxu0 %v373_v42 }
  0x85   : > { %1516 = vmatprep.mubr.f32.mxu0 %v374_v43 }
  0x88   : > { %1517 = vmatmul.mubr.f32.gmra.mrb[10].mxu0 %v375_v44 }
  0x89   : > { %1519 = vmatprep.mubr.f32.mxu0 %v376_v45 }
  0x8c   : > { %1520 = vmatmul.mubr.f32.gmra.mrb[12].mxu0 %v377_v46 }
  0x8d   : > { %1522 = vmatprep.mubr.f32.mxu0 %v378_v47 }
  0x90   : > { %1523 = vmatmul.mubr.f32.gmra.mrb[14].mxu0 %v379_v48 }
 0x147   : > { %v1503_v56 = vpop.f32.mrb[0].mxu0 }
 0x148   : > { %v469_v59 = vpop.f32.mrb[1].mxu0  ;;  %v475_v61 = vadd.f32 %v1503_v56, %v1311_v55 }
 0x149   : > { %v470_v60 = vadd.f32 %v1311_v55, %v469_v59 }
 0x14b   : > { %v1506_v63 = vpop.f32.mrb[2].mxu0  ;;  %1541 = vmatprep.mubr.msk.f32.mxu1 %vm563_vm0, %v470_v60 }
 0x14c   : > { %v479_v0 = vpop.f32.mrb[3].mxu0  ;;  %1542 = vmatmul.mubr.msk.f32.vlgmr.msra.gmra.mrb[0].mxu1 %vm563_vm0, %v475_v61  ;;  %v485_v2 = vadd.f32 %v1506_v63, %v1311_v55 }
 0x14d   : > { %v480_v1 = vadd.f32 %v1311_v55, %v479_v0  ;;  %1688 = vmatpush3.bf16.msra.mxu1 %v1685_v54 }
 0x14e   : > { %1690 = vmatprep.subr.bf16.mxu1 %v1689_v62 }
 0x14f   : > { %v1509_v3 = vpop.f32.mrb[4].mxu0  ;;  %1544 = vmatprep.mubr.msk.f32.mxu1 %vm563_vm0, %v480_v1 }
 0x150   : > { %v489_v4 = vpop.f32.mrb[5].mxu0  ;;  %1545 = vmatmul.mubr.msk.f32.gmra.mrb[2].mxu1 %vm563_vm0, %v485_v2  ;;  %v495_v6 = vadd.f32 %v1509_v3, %v1311_v55 }
 0x151   : > { %v490_v5 = vadd.f32 %v1311_v55, %v489_v4  ;;  %1692 = vmatpush3.bf16.msra.mxu1 %v1689_v62 }
 0x152   : > { %1709 = vmatprep.subr.bf16.mxu1 %v1693_v30 }
 0x153   : > { %v1512_v7 = vpop.f32.mrb[6].mxu0  ;;  %1547 = vmatprep.mubr.msk.f32.mxu1 %vm563_vm0, %v490_v5 }
 0x154   : > { %v499_v8 = vpop.f32.mrb[7].mxu0  ;;  %1548 = vmatmul.mubr.msk.f32.gmra.mrb[4].mxu1 %vm563_vm0, %v495_v6  ;;  %v505_v10 = vadd.f32 %v1512_v7, %v1311_v55 }
 0x155   : > { %v500_v9 = vadd.f32 %v1311_v55, %v499_v8 }
 0x157   : > { %v1515_v11 = vpop.f32.mrb[8].mxu0  ;;  %1550 = vmatprep.mubr.msk.f32.mxu1 %vm563_vm0, %v500_v9 }
 0x158   : > { %v509_v12 = vpop.f32.mrb[9].mxu0  ;;  %1551 = vmatmul.mubr.msk.f32.gmra.mrb[6].mxu1 %vm563_vm0, %v505_v10  ;;  %v515_v14 = vadd.f32 %v1515_v11, %v1311_v55 }
 0x159   : > { %v510_v13 = vadd.f32 %v1311_v55, %v509_v12 }
 0x15b   : > { %v1518_v15 = vpop.f32.mrb[10].mxu0  ;;  %1553 = vmatprep.mubr.msk.f32.mxu1 %vm563_vm0, %v510_v13 }
 0x15c   : > { %v519_v16 = vpop.f32.mrb[11].mxu0  ;;  %1554 = vmatmul.mubr.msk.f32.gmra.mrb[8].mxu1 %vm563_vm0, %v515_v14  ;;  %v525_v18 = vadd.f32 %v1518_v15, %v1311_v55 }
 0x15d   : > { %v520_v17 = vadd.f32 %v1311_v55, %v519_v16 }
 0x15f   : > { %v1521_v19 = vpop.f32.mrb[12].mxu0  ;;  %1556 = vmatprep.mubr.msk.f32.mxu1 %vm563_vm0, %v520_v17 }
 0x160   : > { %v529_v20 = vpop.f32.mrb[13].mxu0  ;;  %1557 = vmatmul.mubr.msk.f32.gmra.mrb[10].mxu1 %vm563_vm0, %v525_v18  ;;  %v535_v22 = vadd.f32 %v1521_v19, %v1311_v55 }
 0x161   : > { %v530_v21 = vadd.f32 %v1311_v55, %v529_v20 }
 0x163   : > { %v1524_v23 = vpop.f32.mrb[14].mxu0  ;;  %1559 = vmatprep.mubr.msk.f32.mxu1 %vm563_vm0, %v530_v21  ;;  %v984_v21 = vld [vmem:[#allocation5 + $0x30] sm:$0xff] }
 0x164   : > { %v539_v24 = vpop.f32.mrb[15].mxu0  ;;  %1560 = vmatmul.mubr.msk.f32.gmra.mrb[12].mxu1 %vm563_vm0, %v535_v22  ;;  %v545_v26 = vadd.f32 %v1524_v23, %v1311_v55  ;;  %v985_v22 = vld [vmem:[#allocation5 + $0x38] sm:$0xff] }
 0x165   : > { %v540_v25 = vadd.f32 %v1311_v55, %v539_v24  ;;  %v1705_v23 = vpack.c.bf16 %v985_v22, %v984_v21  ;;  %v1329_v24 = vld [vmem:[%s2337_s6] ss:$0 sm:$0xff] }
 0x167   : > { %1562 = vmatprep.mubr.msk.f32.mxu1 %vm563_vm0, %v540_v25  ;;  %1706 = vmatprep.subr.bf16.mxu0 %v1705_v23 }
 0x168   : > { %1563 = vmatmul.mubr.msk.f32.gmra.mrb[14].mxu1 %vm563_vm0, %v545_v26  ;;  %1708 = vmatpush3.bf16.msra.mxu0 %v1705_v23 }
 0x21f   : > { %v1543_v37 = vpop.f32.mrb[0].mxu1 }
 0x220   : > { %v684_v38 = vadd.f32 %v1543_v37, %v2202_v36  ;;  %v678_v39 = vpop.f32.mrb[1].mxu1 }
 0x221   : > { %v679_v40 = vadd.f32 %v2202_v36, %v678_v39 }
 0x222   : > { %v758_v43 = vmax.f32 %v684_v38, 0.0 }
 0x223   : > { %v757_v41 = vmax.f32 %v679_v40, 0.0  ;;  %v1546_v42 = vpop.f32.mrb[2].mxu1 }
 0x224   : > { %v694_v44 = vadd.f32 %v1546_v42, %v2202_v36  ;;  %v688_v45 = vpop.f32.mrb[3].mxu1 }
 0x225   : > { %v689_v46 = vadd.f32 %v2202_v36, %v688_v45  ;;  %1573 = vmatprep.mubr.msk.f32.mxu1 %vm784_vm1, %v757_v41 }
 0x226   : > { %1574 = vmatmul.mubr.msk.f32.vlgmr.msra.gmra.mrb[16].mxu1 %vm784_vm1, %v758_v43  ;;  %v760_v49 = vmax.f32 %v694_v44, 0.0 }
 0x227   : > { %v759_v47 = vmax.f32 %v689_v46, 0.0  ;;  %v1549_v48 = vpop.f32.mrb[4].mxu1  ;;  %1713 = vmatpush3.bf16.msra.mxu1 %v1693_v30 }
 0x228   : > { %v704_v50 = vadd.f32 %v1549_v48, %v2202_v36  ;;  %v698_v51 = vpop.f32.mrb[5].mxu1  ;;  %1710 = vmatprep.subr.bf16.mxu1 %v1697_v32 }
 0x229   : > { %v699_v52 = vadd.f32 %v2202_v36, %v698_v51  ;;  %1576 = vmatprep.mubr.msk.f32.mxu1 %vm784_vm1, %v759_v47 }
 0x22a   : > { %1577 = vmatmul.mubr.msk.f32.gmra.mrb[18].mxu1 %vm784_vm1, %v760_v49  ;;  %v762_v55 = vmax.f32 %v704_v50, 0.0 }
 0x22b   : > { %v761_v53 = vmax.f32 %v699_v52, 0.0  ;;  %v1552_v54 = vpop.f32.mrb[6].mxu1  ;;  %1714 = vmatpush3.bf16.msra.mxu1 %v1697_v32 }
 0x22c   : > { %v714_v56 = vadd.f32 %v1552_v54, %v2202_v36  ;;  %v708_v57 = vpop.f32.mrb[7].mxu1  ;;  %1711 = vmatprep.subr.bf16.mxu1 %v1701_v35 }
 0x22d   : > { %v709_v58 = vadd.f32 %v2202_v36, %v708_v57  ;;  %1579 = vmatprep.mubr.msk.f32.mxu1 %vm784_vm1, %v761_v53  ;;  %v1346_v57 = vld [vmem:[%s2339_s8] ss:$0 sm:$0xff] }
 0x22e   : > { %1580 = vmatmul.mubr.msk.f32.gmra.mrb[20].mxu1 %vm784_vm1, %v762_v55  ;;  %v764_v61 = vmax.f32 %v714_v56, 0.0 }
 0x22f   : > { %v763_v59 = vmax.f32 %v709_v58, 0.0  ;;  %v1555_v60 = vpop.f32.mrb[8].mxu1  ;;  %1715 = vmatpush3.bf16.msra.mxu1 %v1701_v35 }
 0x230   : > { %v724_v62 = vadd.f32 %v1555_v60, %v2202_v36  ;;  %v718_v63 = vpop.f32.mrb[9].mxu1  ;;  %1712 = vmatprep.subr.bf16.mxu1 %v1705_v23 }
 0x231   : > { %v719_v0 = vadd.f32 %v2202_v36, %v718_v63  ;;  %1582 = vmatprep.mubr.msk.f32.mxu1 %vm784_vm1, %v763_v59 }
 0x232   : > { %1583 = vmatmul.mubr.msk.f32.gmra.mrb[22].mxu1 %vm784_vm1, %v764_v61  ;;  %v766_v3 = vmax.f32 %v724_v62, 0.0 }
 0x233   : > { %v765_v1 = vmax.f32 %v719_v0, 0.0  ;;  %v1558_v2 = vpop.f32.mrb[10].mxu1  ;;  %1716 = vmatpush3.bf16.msra.mxu1 %v1705_v23 }
 0x234   : > { %v734_v4 = vadd.f32 %v1558_v2, %v2202_v36  ;;  %v728_v5 = vpop.f32.mrb[11].mxu1 }
 0x235   : > { %v729_v6 = vadd.f32 %v2202_v36, %v728_v5  ;;  %1585 = vmatprep.mubr.msk.f32.mxu1 %vm784_vm1, %v765_v1 }
 0x236   : > { %1586 = vmatmul.mubr.msk.f32.gmra.mrb[24].mxu1 %vm784_vm1, %v766_v3  ;;  %v768_v9 = vmax.f32 %v734_v4, 0.0 }
 0x237   : > { %v767_v7 = vmax.f32 %v729_v6, 0.0  ;;  %v1561_v8 = vpop.f32.mrb[12].mxu1 }
 0x238   : > { %v744_v10 = vadd.f32 %v1561_v8, %v2202_v36  ;;  %v738_v11 = vpop.f32.mrb[13].mxu1 }
 0x239   : > { %v739_v12 = vadd.f32 %v2202_v36, %v738_v11  ;;  %1588 = vmatprep.mubr.msk.f32.mxu1 %vm784_vm1, %v767_v7 }
 0x23a   : > { %1589 = vmatmul.mubr.msk.f32.gmra.mrb[26].mxu1 %vm784_vm1, %v768_v9  ;;  %v770_v15 = vmax.f32 %v744_v10, 0.0 }
 0x23b   : > { %v769_v13 = vmax.f32 %v739_v12, 0.0  ;;  %v1564_v14 = vpop.f32.mrb[14].mxu1 }
 0x23c   : > { %v754_v16 = vadd.f32 %v1564_v14, %v2202_v36  ;;  %v748_v17 = vpop.f32.mrb[15].mxu1 }
 0x23d   : > { %v749_v18 = vadd.f32 %v2202_v36, %v748_v17  ;;  %1591 = vmatprep.mubr.msk.f32.mxu1 %vm784_vm1, %v769_v13 }
 0x23e   : > { %1592 = vmatmul.mubr.msk.f32.gmra.mrb[28].mxu1 %vm784_vm1, %v770_v15  ;;  %v772_v20 = vmax.f32 %v754_v16, 0.0 }
 0x23f   : > { %v771_v19 = vmax.f32 %v749_v18, 0.0 }
 0x241   : > { %1594 = vmatprep.mubr.msk.f32.mxu1 %vm784_vm1, %v771_v19 }
 0x242   : > { %1595 = vmatmul.mubr.msk.f32.gmra.mrb[30].mxu1 %vm784_vm1, %v772_v20 }
 0x2f9   : > { %v1575_v25 = vpop.f32.mrb[16].mxu1 }
 0x2fa   : > { %v899_v26 = vpop.f32.mrb[17].mxu1  ;;  %v905_v28 = vadd.f32 %v1575_v25, %v1329_v24 }
 0x2fb   : > { %v900_v27 = vadd.f32 %v1329_v24, %v899_v26 }
 0x2fd   : > { %v1578_v29 = vpop.f32.mrb[18].mxu1  ;;  %1613 = vmatprep.mubr.msk.f32.mxu0 %vm563_vm0, %v900_v27 }
 0x2fe   : > { %v909_v30 = vpop.f32.mrb[19].mxu1  ;;  %1614 = vmatmul.mubr.msk.f32.vlgmr.msra.gmra.mrb[16].mxu0 %vm563_vm0, %v905_v28  ;;  %v915_v32 = vadd.f32 %v1578_v29, %v1329_v24 }
 0x2ff   : > { %v910_v31 = vadd.f32 %v1329_v24, %v909_v30 }
 0x301   : > { %v1581_v33 = vpop.f32.mrb[20].mxu1  ;;  %1616 = vmatprep.mubr.msk.f32.mxu0 %vm563_vm0, %v910_v31 }
 0x302   : > { %v919_v34 = vpop.f32.mrb[21].mxu1  ;;  %1617 = vmatmul.mubr.msk.f32.gmra.mrb[18].mxu0 %vm563_vm0, %v915_v32  ;;  %v925_v36 = vadd.f32 %v1581_v33, %v1329_v24 }
 0x303   : > { %v920_v35 = vadd.f32 %v1329_v24, %v919_v34 }
 0x305   : > { %v1584_v37 = vpop.f32.mrb[22].mxu1  ;;  %1619 = vmatprep.mubr.msk.f32.mxu0 %vm563_vm0, %v920_v35 }
 0x306   : > { %v929_v38 = vpop.f32.mrb[23].mxu1  ;;  %1620 = vmatmul.mubr.msk.f32.gmra.mrb[20].mxu0 %vm563_vm0, %v925_v36  ;;  %v935_v40 = vadd.f32 %v1584_v37, %v1329_v24 }
 0x307   : > { %v930_v39 = vadd.f32 %v1329_v24, %v929_v38 }
 0x309   : > { %v1587_v41 = vpop.f32.mrb[24].mxu1  ;;  %1622 = vmatprep.mubr.msk.f32.mxu0 %vm563_vm0, %v930_v39 }
 0x30a   : > { %v939_v42 = vpop.f32.mrb[25].mxu1  ;;  %1623 = vmatmul.mubr.msk.f32.gmra.mrb[22].mxu0 %vm563_vm0, %v935_v40  ;;  %v945_v44 = vadd.f32 %v1587_v41, %v1329_v24 }
 0x30b   : > { %v940_v43 = vadd.f32 %v1329_v24, %v939_v42 }
 0x30d   : > { %v1590_v45 = vpop.f32.mrb[26].mxu1  ;;  %1625 = vmatprep.mubr.msk.f32.mxu0 %vm563_vm0, %v940_v43 }
 0x30e   : > { %v949_v46 = vpop.f32.mrb[27].mxu1  ;;  %1626 = vmatmul.mubr.msk.f32.gmra.mrb[24].mxu0 %vm563_vm0, %v945_v44  ;;  %v955_v48 = vadd.f32 %v1590_v45, %v1329_v24 }
 0x30f   : > { %v950_v47 = vadd.f32 %v1329_v24, %v949_v46 }
 0x311   : > { %v1593_v49 = vpop.f32.mrb[28].mxu1  ;;  %1628 = vmatprep.mubr.msk.f32.mxu0 %vm563_vm0, %v950_v47 }
 0x312   : > { %v959_v50 = vpop.f32.mrb[29].mxu1  ;;  %1629 = vmatmul.mubr.msk.f32.gmra.mrb[26].mxu0 %vm563_vm0, %v955_v48  ;;  %v965_v52 = vadd.f32 %v1593_v49, %v1329_v24 }
 0x313   : > { %v960_v51 = vadd.f32 %v1329_v24, %v959_v50 }
 0x315   : > { %v1596_v53 = vpop.f32.mrb[30].mxu1  ;;  %1631 = vmatprep.mubr.msk.f32.mxu1 %vm563_vm0, %v960_v51 }
 0x316   : > { %v969_v54 = vpop.f32.mrb[31].mxu1  ;;  %1632 = vmatmul.mubr.msk.f32.vlgmr.msra.gmra.mrb[32].mxu1 %vm563_vm0, %v965_v52  ;;  %v975_v56 = vadd.f32 %v1596_v53, %v1329_v24 }
 0x317   : > { %v970_v55 = vadd.f32 %v1329_v24, %v969_v54 }
 0x319   : > { %1634 = vmatprep.mubr.msk.f32.mxu1 %vm563_vm0, %v970_v55 }
 0x31a   : > { %1635 = vmatmul.mubr.msk.f32.gmra.mrb[34].mxu1 %vm563_vm0, %v975_v56 }
 0x3d1   : > { %v1615_v58 = vpop.f32.mrb[16].mxu0 }
 0x3d2   : > { %v1113_v59 = vadd.f32 %v1615_v58, %v1346_v57  ;;  %v1107_v60 = vpop.f32.mrb[17].mxu0 }
 0x3d3   : > { %v1108_v61 = vadd.f32 %v1346_v57, %v1107_v60 }
 0x3d4   : > { %1187 = vst [vmem:[%s2261_s29 + $0x8] sm:$0xff] %v1113_v59 }
 0x3d5   : > { %1186 = vst [vmem:[%s2261_s29] sm:$0xff] %v1108_v61  ;;  %v1618_v62 = vpop.f32.mrb[18].mxu0 }
 0x3d6   : > { %v1123_v63 = vadd.f32 %v1618_v62, %v1346_v57  ;;  %v1117_v0 = vpop.f32.mrb[19].mxu0 }
 0x3d7   : > { %v1118_v1 = vadd.f32 %v1346_v57, %v1117_v0 }
 0x3d8   : > { %1189 = vst [vmem:[%s2261_s29 + $0x18] sm:$0xff] %v1123_v63 }
 0x3d9   : > { %1188 = vst [vmem:[%s2261_s29 + $0x10] sm:$0xff] %v1118_v1  ;;  %v1621_v2 = vpop.f32.mrb[20].mxu0 }
 0x3da   : > { %v1133_v3 = vadd.f32 %v1621_v2, %v1346_v57  ;;  %v1127_v4 = vpop.f32.mrb[21].mxu0 }
 0x3db   : > { %v1128_v5 = vadd.f32 %v1346_v57, %v1127_v4 }
 0x3dc   : > { %1191 = vst [vmem:[%s2261_s29 + $0x28] sm:$0xff] %v1133_v3 }
 0x3dd   : > { %1190 = vst [vmem:[%s2261_s29 + $0x20] sm:$0xff] %v1128_v5  ;;  %v1624_v6 = vpop.f32.mrb[22].mxu0 }
 0x3de   : > { %v1143_v7 = vadd.f32 %v1624_v6, %v1346_v57  ;;  %v1137_v8 = vpop.f32.mrb[23].mxu0 }
 0x3df   : > { %v1138_v9 = vadd.f32 %v1346_v57, %v1137_v8 }
 0x3e0   : > { %1193 = vst [vmem:[%s2261_s29 + $0x38] sm:$0xff] %v1143_v7 }
 0x3e1   : > { %1192 = vst [vmem:[%s2261_s29 + $0x30] sm:$0xff] %v1138_v9  ;;  %v1627_v10 = vpop.f32.mrb[24].mxu0 }
 0x3e2   : > { %v1153_v11 = vadd.f32 %v1627_v10, %v1346_v57  ;;  %v1147_v12 = vpop.f32.mrb[25].mxu0 }
 0x3e3   : > { %v1148_v13 = vadd.f32 %v1346_v57, %v1147_v12 }
 0x3e4   : > { %1195 = vst [vmem:[%s2261_s29 + $0x48] sm:$0xff] %v1153_v11 }
 0x3e5   : > { %1194 = vst [vmem:[%s2261_s29 + $0x40] sm:$0xff] %v1148_v13  ;;  %v1630_v14 = vpop.f32.mrb[26].mxu0 }
 0x3e6   : > { %v1163_v15 = vadd.f32 %v1630_v14, %v1346_v57  ;;  %v1157_v16 = vpop.f32.mrb[27].mxu0 }
 0x3e7   : > { %v1158_v17 = vadd.f32 %v1346_v57, %v1157_v16 }
 0x3e8   : > { %1197 = vst [vmem:[%s2261_s29 + $0x58] sm:$0xff] %v1163_v15 }
 0x3e9   : > { %1196 = vst [vmem:[%s2261_s29 + $0x50] sm:$0xff] %v1158_v17  ;;  %v1633_v18 = vpop.f32.mrb[32].mxu1 }
 0x3ea   : > { %v1173_v19 = vadd.f32 %v1633_v18, %v1346_v57  ;;  %v1167_v20 = vpop.f32.mrb[33].mxu1 }
 0x3eb   : > { %v1168_v21 = vadd.f32 %v1346_v57, %v1167_v20 }
 0x3ec   : > { %1199 = vst [vmem:[%s2261_s29 + $0x68] sm:$0xff] %v1173_v19 }
 0x3ed   : > { %1198 = vst [vmem:[%s2261_s29 + $0x60] sm:$0xff] %v1168_v21  ;;  %v1636_v22 = vpop.f32.mrb[34].mxu1 }
 0x3ee   : > { %v1183_v23 = vadd.f32 %v1636_v22, %v1346_v57  ;;  %v1177_v24 = vpop.f32.mrb[35].mxu1 }
 0x3ef   : > { %v1178_v25 = vadd.f32 %v1346_v57, %v1177_v24 }
 0x3f0   : > { %1201 = vst [vmem:[%s2261_s29 + $0x78] sm:$0xff] %v1183_v23 }
 0x3f1   : > { %1200 = vst [vmem:[%s2261_s29 + $0x70] sm:$0xff] %v1178_v25 }
 0x3f2   : > { %1850 = shalt.err (!%p1847_p11)
}
 0x3f3   : > { %s1851_s15 = scalar_lea.hbm %s2282_s22, 2048  ;;  %s1855_s27 = scalar_lea.hbm %s2340_s9, 4096 }
 0x3f4   : > { %p1852_p13 = scmp.ne.s32.totalorder %s2282_s22, %s1851_s15  ;;  %p1856_p6 = scmp.lt.u32.totalorder %s2282_s22, %s2340_s9 }
 0x3f5   : > { %p1857_p9 = scmp.lt.u32.totalorder %s1855_s27, %s1851_s15  ;;  %p1859_p12 = scmp.lt.u32.totalorder %s1851_s15, %s2282_s22 }
 0x3f6   : > { %p1853_p5 = pnand %p1852_p13, %p2359_p1 }
 0x3f7   : > { %p1858_p10 = por %p1857_p9, %p1856_p6 }
 0x3f8   : > { %p1854_p0 = pneg %p1853_p5 }
 0x3f9   : > { %p1860_p2 = por %p1859_p12, %p1858_p10 }
 0x3fb   : > { %p1861_p3 = pnand %p1860_p2, %p1854_p0 }
 0x3fd   : > { %1864 = shalt.err (!%p1861_p3)
}
 0x3fe   : > { %s1914_s24 = smov 128   ;;  %s1915_s16 = smov 8  }
 0x3ff   : > { %1725 = dma.vmem_to_hbm [thread:$0]  (%p2359_p1), %s2284_s14, 2048, %s2282_s22, %s2290_s13, %s1914_s24, %s1914_s24, %s1915_s16  }
 0x400 PF: > { %p1742_p4 = scmp.ge.s32.totalorder %s1907_s12, 2  ;;  %s1231_s17 = sand.u32 1, %s1895_s30  }
 0x401   : > { %p2360_p7 = scmp.ne.s32.totalorder %s2351_s20, 0  ;;  %s1232_s25 = scalar_lea.sflag [#allocation4], %s1231_s17 }
 0x403   : > { %p1735_p8 = pnand %p1742_p4, %p2360_p7 }
 0x405   : > { %1890 = dma.done.wait (!%p1735_p8), %s1232_s25, 2048  }
 0x406   : > { %1892 = vsyncadd (!%p1735_p8), %s1232_s25, 4294965248  ;;  %s2361_s12 = sld [smem:[#allocation12_spill]]  ;;  %s2362_s26 = sld [smem:[#allocation11_spill]] }
 0x407   : > { %s2363_s11 = sld [smem:[#allocation13_spill]]  ;;  %s2364_s30 = smov %s1899_s10 }
 0x40c   : > { %p21_p11 = scmp.ge.s32.totalorder %s2361_s12, 4   ;;  %s2365_s10 = smov %s2362_s26 }
 0x40e   :  { %23 = sbr.rel (!%p21_p11) target bundleno = 5 (0x5), region = 100 }
 0x415   :  { %1237 = vsyncpa [#allocation3], 1 }
 0x416   :  { %1239 = vsyncpa [#allocation3 + $0x1], 1 }
 0x417   :  { %1240 = vsyncpa [#allocation6], 1 }
 0x418   :  { %1241 = vsyncpa [#allocation4], 1 }
 0x419   :  { %1243 = vsyncpa [#allocation4 + $0x1], 1 }

</bundles_post_ra>
